<compile_context>
chip_gen: v6e
topology: v6e:2x2x1
jax: 0.10.0
libtpu: 0.0.40
codegen_flags: <defaults>
</compile_context>

<pallas_src>
import jax
import jax.numpy as jnp
from jax import lax
from jax.experimental import pallas as pl
from jax.experimental.pallas import tpu as pltpu


def embedding_kernel(idx_ref, table_ref, out_ref):
    """One grid step: gather rows_g * pack token embeddings via one MXU matmul.

    idx_ref  : VMEM (rows_g, pack) int32 -- token ids, column j pre-offset by j*V
    table_ref: VMEM (pack*V, pack*D)     -- block-diagonal embedding table
    out_ref  : VMEM (rows_g, pack*D)     -- lane-dense packed embeddings
    """
    rows_g, pack = idx_ref.shape
    kdim = table_ref.shape[0]                       # pack * V
    idx = idx_ref[...]                              # (rows_g, pack) int32
    k_iota = lax.broadcasted_iota(jnp.int32, (rows_g, kdim), 1)

    # Union of `pack` disjoint one-hots -> selection matrix for the matmul.
    onehot = jnp.zeros((rows_g, kdim), dtype=table_ref.dtype)
    for j in range(pack):                           # static, tiny (pack <= 4 here)
        onehot = onehot + (k_iota == idx[:, j:j + 1]).astype(table_ref.dtype)

    out_ref[...] = jnp.dot(
        onehot, table_ref[...],
        preferred_element_type=jnp.float32,
        precision=lax.Precision.HIGHEST,            # exact gather semantics
    ).astype(out_ref.dtype)


def embedding_forward(x, table, *, tokens_per_block=512):
    """Pallas equivalent of nn.Embedding(vocab, dim, padding_idx=0)(x) forward.

    x     : [B, S, C] integer token ids
    table : [V, D] embedding weight (padding_idx row already zeroed)
    returns [B, S, C, D]
    """
    B, S, C = x.shape
    V, D = table.shape
    N = B * S * C

    # Pack `pack` tokens per output row so stores use full 128-lane tiles.
    if D % 128 == 0:
        pack = 1                    # already lane-dense
    elif 128 % D == 0:
        pack = 128 // D             # D=32 -> pack=4 -> 128-lane output rows
    else:
        pack = 1                    # fallback: masked (sub-128-lane) stores

    # Block size must be a multiple of pack*8 so the block sublane dim is aligned.
    step = pack * 8
    n_min = ((N + step - 1) // step) * step          # N rounded up to alignment
    tokens_per_block = max(step, (tokens_per_block // step) * step)
    tokens_per_block = min(tokens_per_block, n_min)  # don't over-pad tiny inputs
    n_pad = ((N + tokens_per_block - 1) // tokens_per_block) * tokens_per_block
    rows_g = tokens_per_block // pack

    idx = x.reshape(-1).astype(jnp.int32)
    if n_pad != N:
        idx = jnp.pad(idx, (0, n_pad - N))          # pad id 0: harmless, sliced off
    # Column j must select block j of the block-diagonal table -> offset by j*V.
    idx = idx.reshape(n_pad // pack, pack) \
        + jnp.arange(pack, dtype=jnp.int32)[None, :] * V

    # Block-diagonal table: onehot @ table_bd concatenates the pack tokens'
    # embeddings of each row along the 128-lane output axis.
    table_bd = jnp.kron(jnp.eye(pack, dtype=table.dtype), table) if pack > 1 else table

    grid = (n_pad // tokens_per_block,)
    itemsize = table.dtype.itemsize
    cost = pl.CostEstimate(
        flops=int(2 * n_pad * pack * V * D),
        transcendentals=0,
        bytes_accessed=int(n_pad * 4 + n_pad * D * itemsize
                           + table_bd.size * itemsize),
    )

    out_packed = pl.pallas_call(
        embedding_kernel,
        out_shape=jax.ShapeDtypeStruct((n_pad // pack, pack * D), table.dtype),
        grid_spec=pltpu.PrefetchScalarGridSpec(
            num_scalar_prefetch=0,
            grid=grid,
            in_specs=[
                # One block of grouped token ids per grid step.
                pl.BlockSpec((rows_g, pack), lambda i: (i, 0)),
                # Full (block-diagonal) table, resident in VMEM every step.
                pl.BlockSpec((pack * V, pack * D), lambda i: (0, 0)),
            ],
            out_specs=pl.BlockSpec((rows_g, pack * D), lambda i: (i, 0)),
        ),
        compiler_params=pltpu.CompilerParams(
            dimension_semantics=("parallel",)),
        cost_estimate=cost,
    )(idx, table_bd)

    # (n_pad/pack, pack*D) row-major is exactly (n_pad, D) row-major: free reshape.
    return out_packed.reshape(n_pad, D)[:N].reshape(B, S, C, D)


if __name__ == "__main__":
    # Module hyper-parameters (small, synthetic)
    vocab_size = 64
    embedding_dim = 32
    padding_idx = 0

    key = jax.random.PRNGKey(0)
    k_w, k_x = jax.random.split(key)
    # nn.Embedding default init ~ N(0,1), padding_idx row zeroed (forward semantics).
    weight = jax.random.normal(k_w, (vocab_size, embedding_dim), jnp.float32)
    weight = weight.at[padding_idx].set(0.0)

    # Input: [batch_size, max_sequence_length, max_character_length]
    batch, seq_len, char_len = 2, 8, 4
    x = jax.random.randint(k_x, (batch, seq_len, char_len), 0, vocab_size,
                           dtype=jnp.int32)
    x = x.at[0, 0, :].set(padding_idx)   # exercise the padding row

    out = embedding_forward(x, weight)
    out = jax.block_until_ready(out)

    # Reference: plain JAX gather (== torch nn.Embedding forward).
    ref = jnp.take(weight, x.reshape(-1), axis=0).reshape(
        batch, seq_len, char_len, embedding_dim)
    assert out.shape == (batch, seq_len, char_len, embedding_dim)
    assert float(jnp.max(jnp.abs(out - ref))) < 1e-5, "mismatch vs reference gather"
    assert bool(jnp.all(out[0, 0, :, :] == 0.0)), "padding_idx row should be zero"
    # TODO(synk): padding_idx's gradient-freezing semantics are backward-only and
    # not represented in this forward kernel.
    print("KERNEL_OK")
</pallas_src>

<mosaic_0001>
module attributes {stable_mosaic.version = 11 : i64} {
  func.func @embedding_kernel(%arg0: i32, %arg1: memref<16x4xi32, #tpu.memory_space<vmem>>, %arg2: memref<256x128xf32, #tpu.memory_space<vmem>>, %arg3: memref<16x128xf32, #tpu.memory_space<vmem>>) attributes {dimension_semantics = [#tpu.dimension_semantics<parallel>], iteration_bounds = array<i64: 1>, scalar_prefetch = 0 : i64, scratch_operands = 0 : i64, tpu.core_type = #tpu.core_type<tc>, window_params = [{transform_indices = @transform_0, window_bounds = array<i64: 16, 4>}, {pipeline_mode = #tpu.pipeline_mode<synchronous>, transform_indices = @transform_1, window_bounds = array<i64: 256, 128>}, {transform_indices = @transform_2, window_bounds = array<i64: 16, 128>}]} {
    %c0 = arith.constant 0 : index
    %c0_0 = arith.constant 0 : index
    %0 = vector.load %arg1[%c0, %c0_0] : memref<16x4xi32, #tpu.memory_space<vmem>>, vector<16x4xi32>
    %1 = tpu.iota {dimensions = array<i32: 1>} : vector<16x256xi32>
    %cst = arith.constant 0.000000e+00 : f32
    %2 = vector.broadcast %cst : f32 to vector<16x256xf32>
    %3 = vector.extract_strided_slice %0 {offsets = [0, 0], sizes = [16, 1], strides = [1, 1]} : vector<16x4xi32> to vector<16x1xi32>
    %4 = vector.broadcast %3 : vector<16x1xi32> to vector<16x256xi32>
    %5 = arith.cmpi eq, %1, %4 : vector<16x256xi32>
    %6 = arith.extui %5 : vector<16x256xi1> to vector<16x256xi32>
    %7 = arith.sitofp %6 : vector<16x256xi32> to vector<16x256xf32>
    %8 = arith.addf %2, %7 : vector<16x256xf32>
    %9 = vector.extract_strided_slice %0 {offsets = [0, 1], sizes = [16, 1], strides = [1, 1]} : vector<16x4xi32> to vector<16x1xi32>
    %10 = vector.broadcast %9 : vector<16x1xi32> to vector<16x256xi32>
    %11 = arith.cmpi eq, %1, %10 : vector<16x256xi32>
    %12 = arith.extui %11 : vector<16x256xi1> to vector<16x256xi32>
    %13 = arith.sitofp %12 : vector<16x256xi32> to vector<16x256xf32>
    %14 = arith.addf %8, %13 : vector<16x256xf32>
    %15 = vector.extract_strided_slice %0 {offsets = [0, 2], sizes = [16, 1], strides = [1, 1]} : vector<16x4xi32> to vector<16x1xi32>
    %16 = vector.broadcast %15 : vector<16x1xi32> to vector<16x256xi32>
    %17 = arith.cmpi eq, %1, %16 : vector<16x256xi32>
    %18 = arith.extui %17 : vector<16x256xi1> to vector<16x256xi32>
    %19 = arith.sitofp %18 : vector<16x256xi32> to vector<16x256xf32>
    %20 = arith.addf %14, %19 : vector<16x256xf32>
    %21 = vector.extract_strided_slice %0 {offsets = [0, 3], sizes = [16, 1], strides = [1, 1]} : vector<16x4xi32> to vector<16x1xi32>
    %22 = vector.broadcast %21 : vector<16x1xi32> to vector<16x256xi32>
    %23 = arith.cmpi eq, %1, %22 : vector<16x256xi32>
    %24 = arith.extui %23 : vector<16x256xi1> to vector<16x256xi32>
    %25 = arith.sitofp %24 : vector<16x256xi32> to vector<16x256xf32>
    %26 = arith.addf %20, %25 : vector<16x256xf32>
    %c0_1 = arith.constant 0 : index
    %c0_2 = arith.constant 0 : index
    %27 = vector.load %arg2[%c0_1, %c0_2] : memref<256x128xf32, #tpu.memory_space<vmem>>, vector<256x128xf32>
    %cst_3 = arith.constant dense<0.000000e+00> : vector<16x128xf32>
    %28 = tpu.matmul %26, %27, %cst_3 {dimension_numbers = #tpu.dot_dimension_numbers<[1], [0], [0], [1], [0, 0, 1, 1], [], []>, precision = #tpu.contract_precision<fp32>} : vector<16x256xf32>, vector<256x128xf32>, vector<16x128xf32> -> vector<16x128xf32>
    %c0_4 = arith.constant 0 : index
    %c0_5 = arith.constant 0 : index
    %29 = vector.load %arg3[%c0_4, %c0_5] : memref<16x128xf32, #tpu.memory_space<vmem>>, vector<16x128xf32>
    tpu.vector_store %arg3[%c0_4, %c0_5], %28 {strides = array<i32>} : memref<16x128xf32, #tpu.memory_space<vmem>>, vector<16x128xf32>,
    return
  }
  func.func @transform_0(%arg0: i32) -> (i32, i32) {
    %c0_i32 = arith.constant 0 : i32
    %c0_i32_0 = arith.constant 0 : i32
    return %arg0, %c0_i32 : i32, i32
  }
  func.func @transform_1(%arg0: i32) -> (i32, i32) {
    %c0_i32 = arith.constant 0 : i32
    %c0_i32_0 = arith.constant 0 : i32
    %c0_i32_1 = arith.constant 0 : i32
    return %c0_i32, %c0_i32_0 : i32, i32
  }
  func.func @transform_2(%arg0: i32) -> (i32, i32) {
    %c0_i32 = arith.constant 0 : i32
    %c0_i32_0 = arith.constant 0 : i32
    return %arg0, %c0_i32 : i32, i32
  }
}

</mosaic_0001>

<bundles_post_ra>
// kernel: tpu_custom_call.1
= control target key start
LH: loop header
LB: loop body
LE: loop exit
PB: predicated region body
PF: predicated region fallthrough
CT: control target
= control target key end

     0   :  { %7 = vsyncpa [#allocation3], 0  ;;  %s1963_s0 = inlined_call_operand.vmem [shape: s32[16,4], index: 0, kind: input, shape index: {}]   ;;  %s1964_s1 = inlined_call_operand.hbm [shape: f32[256,128], index: 1, kind: input, shape index: {}]   ;;  %s1965_s2 = inlined_call_operand.hbm [shape: f32[16,128], index: 2, kind: output, shape index: {}]  }
   0x1   :  { %8 = vsyncpa [#allocation4], 0  ;;  %s1392_s9 = smov [#allocation2]  }
   0x2   :  { %s16_s10 = sshll.u32 %s1392_s9, 4  ;;  %s17_s10 = int_to_ptr.vmem [resolvable:$true] %s16_s10 }
   0x3   :  { %s1356_s11 = scalar_lea.vmem %s17_s10, 4096  ;;  %p1361_p1 = scmp.lt.s32.totalorder %s17_s10, %s17_s10 }
   0x4   :  { %p1357_p0 = scmp.ne.s32.totalorder %s17_s10, %s1356_s11  ;;  %p1362_p2 = scmp.lt.s32.totalorder %s1356_s11, %s1356_s11 }
   0x6   :  { %p1363_p3 = por %p1362_p2, %p1361_p1 }
   0x8   :  { %p1364_p4 = pnand %p1363_p3, %p1357_p0 }
   0xa   :  { %1367 = shalt.err (!%p1364_p4)
}
   0xb   :  { %s1393_s12 = smov 128   ;;  %s1394_s13 = smov 8  }
   0xc   :  { %22 = dma.hbm_to_vmem [thread:$0]  %s1964_s1, 4096, %s17_s10, [#allocation3], %s1393_s12, %s1393_s12, %s1394_s13  }
   0xd   :  { %1388 = dma.done.wait [#allocation3], 4096  }
   0xe   :  { %1389 = vsyncadd [#allocation3], 4294963200  ;;  %v1395_v0 = vmov 2   ;;  %v1396_v1 = vmov 0   ;;  %v26_v2 = vld [vmem:[%s1963_s0] sm:$0xff]  ;;  %v150_v3 = vld [vmem:[#allocation2 + $0xf8] sm:$0xff] }
   0xf   :  { %1343 = vset.pattern.permute.xlu1 %v1395_v0  ;;  %1341 = vset.pattern.permute.xlu0 %v1396_v1  ;;  %v1426_v4 = vand.u32 4294901760, %v150_v3  ;;  %v134_v5 = vld [vmem:[#allocation2 + $0x78] sm:$0xff]  ;;  %v149_v6 = vld [vmem:[#allocation2 + $0xf0] sm:$0xff]  ;;  %v148_v11 = vld [vmem:[#allocation2 + $0xe8] sm:$0xff]  ;;  %v1397_v23 = vmov 3   ;;  %v1398_v24 = vmov 1  }
  0x10   :  { %76 = vperm.xlu1 %1343, %v26_v2   ;;  %32 = vperm.xlu0 %1341, %v26_v2   ;;  %v133_v7 = vld [vmem:[#allocation2 + $0x70] sm:$0xff]  ;;  %v1428_v8 = vand.u32 4294901760, %v134_v5  ;;  %v1430_v9 = vand.u32 4294901760, %v149_v6  ;;  %v132_v12 = vld [vmem:[#allocation2 + $0x68] sm:$0xff]  ;;  %v147_v13 = vld [vmem:[#allocation2 + $0xe0] sm:$0xff]  ;;  %v1437_v15 = vand.u32 4294901760, %v148_v11 }
  0x11   :  { %2043 = vst [vmem:[#allocation8_spill] sm:$0xff] %v1426_v4  ;;  %v1432_v10 = vand.u32 4294901760, %v133_v7  ;;  %v1435_v14 = vsub.f32 %v150_v3, %v1426_v4  ;;  %v1439_v16 = vand.u32 4294901760, %v132_v12  ;;  %v1441_v17 = vand.u32 4294901760, %v147_v13  ;;  %v131_v18 = vld [vmem:[#allocation2 + $0x60] sm:$0xff]  ;;  %1104 = vmatprep.subr.mxu0 %v1426_v4  ;;  %v27_v33 = vld [vmem:[%s1963_s0 + $0x8] sm:$0xff] }
  0x12   :  { %v1445_v19 = vsub.f32 %v134_v5, %v1428_v8  ;;  %v1448_v20 = vsub.f32 %v149_v6, %v1430_v9  ;;  %v1453_v22 = vand.u32 4294901760, %v131_v18  ;;  %1105 = vmatpush3.msra.mxu0 %v1428_v8  ;;  %v1458_v26 = vsub.f32 %v148_v11, %v1437_v15  ;;  %v146_v42 = vld [vmem:[#allocation2 + $0xd8] sm:$0xff]  ;;  %v145_v48 = vld [vmem:[#allocation2 + $0xd0] sm:$0xff]  ;;  %v144_v54 = vld [vmem:[#allocation2 + $0xc8] sm:$0xff]  ;;  %s1400_s0 = smov [#allocation5]  }
  0x13   :  { %2044 = vst [vmem:[#allocation9_spill] sm:$0xff] %v1435_v14  ;;  %v1451_v21 = vsub.f32 %v133_v7, %v1432_v10  ;;  %v1985_v25 = vand.u32 4294901760, %v1435_v14  ;;  %v1461_v27 = vsub.f32 %v132_v12, %v1439_v16  ;;  %v1464_v28 = vsub.f32 %v147_v13, %v1441_v17  ;;  %1106 = vmatprep.subr.mxu0 %v1430_v9  ;;  %v130_v47 = vld [vmem:[#allocation2 + $0x58] sm:$0xff]  ;;  %v129_v49 = vld [vmem:[#allocation2 + $0x50] sm:$0xff]  ;;  %v128_v55 = vld [vmem:[#allocation2 + $0x48] sm:$0xff]  ;;  %s1076_s19 = sshll.u32 %s1400_s0, 4  ;;  %s1077_s19 = int_to_ptr.vmem [resolvable:$true] %s1076_s19 }
  0x14   :  { %1344 = vset.pattern.permute.xlu1 %v1397_v23  ;;  %1342 = vset.pattern.permute.xlu0 %v1398_v24  ;;  %v1983_v29 = vand.u32 4294901760, %v1445_v19  ;;  %v1980_v30 = vand.u32 4294901760, %v1448_v20  ;;  %v1470_v32 = vsub.f32 %v131_v18, %v1453_v22  ;;  %v1978_v35 = vand.u32 4294901760, %v1458_v26  ;;  %v143_v56 = vld [vmem:[#allocation2 + $0xc0] sm:$0xff]  ;;  %s1368_s20 = scalar_lea.vmem %s1077_s19, 256  ;;  %p1373_p6 = scmp.lt.s32.totalorder %s1077_s19, %s1077_s19 }
  0x15   :  { %98 = vperm.xlu1 %1344, %v26_v2   ;;  %54 = vperm.xlu0 %1342, %v26_v2   ;;  %v1979_v31 = vand.u32 4294901760, %v1451_v21  ;;  %v394_v34 = vsub.f32 %v1435_v14, %v1985_v25  ;;  %v1976_v36 = vand.u32 4294901760, %v1461_v27  ;;  %v1975_v37 = vand.u32 4294901760, %v1464_v28  ;;  %v127_v61 = vld [vmem:[#allocation2 + $0x40] sm:$0xff]  ;;  %v121_v25 = vld [vmem:[#allocation2 + $0x10] sm:$0xff]  ;;  %p1369_p5 = scmp.ne.s32.totalorder %s1077_s19, %s1368_s20  ;;  %p1374_p7 = scmp.lt.s32.totalorder %s1368_s20, %s1368_s20 }
  0x16   :  { %v282_v38 = vsub.f32 %v1445_v19, %v1983_v29  ;;  %v401_v39 = vsub.f32 %v1448_v20, %v1980_v30  ;;  %v1974_v41 = vand.u32 4294901760, %v1470_v32  ;;  %1107 = vmatpush3.msra.mxu0 %v1432_v10  ;;  %v408_v44 = vsub.f32 %v1458_v26, %v1978_v35  ;;  %v122_v29 = vld [vmem:[#allocation2 + $0x18] sm:$0xff] }
  0x17   :  { %v289_v40 = vsub.f32 %v1451_v21, %v1979_v31  ;;  %v395_v43 = vand.u32 4294901760, %v394_v34  ;;  %v296_v45 = vsub.f32 %v1461_v27, %v1976_v36  ;;  %v415_v46 = vsub.f32 %v1464_v28, %v1975_v37  ;;  %1108 = vmatprep.subr.mxu0 %v1437_v15  ;;  %v138_v31 = vld [vmem:[#allocation2 + $0x98] sm:$0xff]  ;;  %p1375_p8 = por %p1374_p7, %p1373_p6 }
  0x18   :  { %v283_v50 = vand.u32 4294901760, %v282_v38  ;;  %v402_v51 = vand.u32 4294901760, %v401_v39  ;;  %v303_v53 = vsub.f32 %v1470_v32, %v1974_v41  ;;  %v409_v57 = vand.u32 4294901760, %v408_v44  ;;  %1109 = vmatpush3.msra.mxu0 %v1439_v16 }
  0x19   :  { %1345 = vset.pattern.permute.xlu1 %v1396_v1  ;;  %57 = vperm.xlu0 %1342, %v27_v33   ;;  %v290_v52 = vand.u32 4294901760, %v289_v40  ;;  %v297_v58 = vand.u32 4294901760, %v296_v45  ;;  %v416_v59 = vand.u32 4294901760, %v415_v46  ;;  %v1506_v60 = vand.u32 4294901760, %v146_v42  ;;  %p1376_p9 = pnand %p1375_p8, %p1369_p5 }
  0x1a   :  { %35 = vperm.xlu1 %1345, %v27_v33   ;;  %1142 = vmatprep.subr.mxu1 %v395_v43  ;;  %v304_v62 = vand.u32 4294901760, %v303_v53  ;;  %v1508_v63 = vand.u32 4294901760, %v130_v47  ;;  %v1510_v1 = vand.u32 4294901760, %v145_v48  ;;  %v1512_v2 = vand.u32 4294901760, %v129_v49 }
  0x1b   :  { %1143 = vmatpush3.msra.mxu1 %v283_v50  ;;  %v1516_v3 = vsub.f32 %v146_v42, %v1506_v60  ;;  %v1518_v5 = vand.u32 4294901760, %v144_v54  ;;  %v1520_v6 = vand.u32 4294901760, %v128_v55  ;;  %1110 = vmatprep.subr.mxu0 %v1441_v17  ;;  %v1523_v7 = vand.u32 4294901760, %v143_v56  ;;  %v142_v50 = vld [vmem:[#allocation2 + $0xb8] sm:$0xff] }
  0x1c   :  { %1144 = vmatprep.subr.mxu1 %v402_v51  ;;  %v1526_v11 = vsub.f32 %v130_v47, %v1508_v63  ;;  %v1529_v12 = vsub.f32 %v145_v48, %v1510_v1  ;;  %v1532_v13 = vsub.f32 %v129_v49, %v1512_v2  ;;  %v1534_v18 = vand.u32 4294901760, %v127_v61  ;;  %1111 = vmatpush3.msra.mxu0 %v1453_v22 }
  0x1d   :  { %1347 = vset.pattern.permute.xlu0 %v1397_v23  ;;  %1145 = vmatpush3.msra.mxu1 %v290_v52  ;;  %v1972_v24 = vand.u32 4294901760, %v1516_v3  ;;  %v1539_v34 = vsub.f32 %v144_v54, %v1518_v5  ;;  %v1542_v23 = vsub.f32 %v128_v55, %v1520_v6  ;;  %v1545_v38 = vsub.f32 %v143_v56, %v1523_v7  ;;  %v126_v55 = vld [vmem:[#allocation2 + $0x38] sm:$0xff]  ;;  %v141_v56 = vld [vmem:[#allocation2 + $0xb0] sm:$0xff] }
  0x1e   :  { %1346 = vset.pattern.permute.xlu1 %v1395_v0  ;;  %101 = vperm.xlu0 %1347, %v27_v33   ;;  %v1971_v39 = vand.u32 4294901760, %v1526_v11  ;;  %v1970_v40 = vand.u32 4294901760, %v1529_v12  ;;  %v1968_v0 = vand.u32 4294901760, %v1532_v13  ;;  %v1551_v42 = vsub.f32 %v127_v61, %v1534_v18 }
  0x1f   :  { %79 = vperm.xlu1 %1346, %v27_v33   ;;  %1146 = vmatprep.subr.mxu1 %v409_v57  ;;  %v422_v43 = vsub.f32 %v1516_v3, %v1972_v24  ;;  %v1967_v44 = vand.u32 4294901760, %v1539_v34  ;;  %v1966_v45 = vand.u32 4294901760, %v1542_v23  ;;  %v1969_v33 = vand.u32 4294901760, %v1545_v38  ;;  %v125_v57 = vld [vmem:[#allocation2 + $0x30] sm:$0xff] }
  0x20   :  { %2045 = vst [vmem:[#allocation10_spill] sm:$0xff] %v1551_v42  ;;  %1147 = vmatpush3.msra.mxu1 %v297_v58  ;;  %v310_v46 = vsub.f32 %v1526_v11, %v1971_v39  ;;  %v429_v47 = vsub.f32 %v1529_v12, %v1970_v40  ;;  %v317_v48 = vsub.f32 %v1532_v13, %v1968_v0  ;;  %v1973_v49 = vand.u32 4294901760, %v1551_v42 }
  0x21   :  { %1148 = vmatprep.subr.mxu1 %v416_v59  ;;  %1112 = vmatprep.subr.mxu0 %v1506_v60  ;;  %v423_v51 = vand.u32 4294901760, %v422_v43  ;;  %v436_v52 = vsub.f32 %v1539_v34, %v1967_v44  ;;  %v324_v53 = vsub.f32 %v1542_v23, %v1966_v45  ;;  %v443_v54 = vsub.f32 %v1545_v38, %v1969_v33  ;;  %v140_v43 = vld [vmem:[#allocation2 + $0xa8] sm:$0xff]  ;;  %v139_v44 = vld [vmem:[#allocation2 + $0xa0] sm:$0xff] }
  0x22   :  { %1149 = vmatpush3.msra.mxu1 %v304_v62  ;;  %1113 = vmatpush3.msra.mxu0 %v1508_v63  ;;  %v311_v58 = vand.u32 4294901760, %v310_v46  ;;  %v430_v59 = vand.u32 4294901760, %v429_v47  ;;  %v318_v61 = vand.u32 4294901760, %v317_v48  ;;  %v331_v62 = vsub.f32 %v1551_v42, %v1973_v49  ;;  %v124_v45 = vld [vmem:[#allocation2 + $0x28] sm:$0xff]  ;;  %v123_v46 = vld [vmem:[#allocation2 + $0x20] sm:$0xff] }
  0x23   :  { %1114 = vmatprep.subr.mxu0 %v1510_v1  ;;  %1150 = vmatprep.subr.mxu1 %v423_v51  ;;  %v437_v0 = vand.u32 4294901760, %v436_v52  ;;  %v325_v33 = vand.u32 4294901760, %v324_v53  ;;  %v444_v40 = vand.u32 4294901760, %v443_v54  ;;  %v1585_v39 = vand.u32 4294901760, %v142_v50 }
  0x24   :  { %1115 = vmatpush3.msra.mxu0 %v1512_v2  ;;  %1151 = vmatpush3.msra.mxu1 %v311_v58  ;;  %v332_v47 = vand.u32 4294901760, %v331_v62  ;;  %v1588_v48 = vand.u32 4294901760, %v126_v55  ;;  %v1590_v24 = vand.u32 4294901760, %v141_v56  ;;  %v1592_v49 = vand.u32 4294901760, %v125_v57 }
  0x25   :  { %1116 = vmatprep.subr.mxu0 %v1518_v5  ;;  %1152 = vmatprep.subr.mxu1 %v430_v59  ;;  %v1596_v51 = vsub.f32 %v142_v50, %v1585_v39  ;;  %v1598_v52 = vand.u32 4294901760, %v140_v43  ;;  %v1601_v53 = vand.u32 4294901760, %v124_v45  ;;  %v1603_v54 = vand.u32 4294901760, %v139_v44 }
  0x26   :  { %1117 = vmatpush3.msra.mxu0 %v1520_v6  ;;  %1153 = vmatpush3.msra.mxu1 %v318_v61  ;;  %v1606_v58 = vsub.f32 %v126_v55, %v1588_v48  ;;  %v1609_v62 = vsub.f32 %v141_v56, %v1590_v24  ;;  %v1612_v59 = vsub.f32 %v125_v57, %v1592_v49  ;;  %v1615_v50 = vand.u32 4294901760, %v123_v46 }
  0x27   :  { %2046 = vst [vmem:[#allocation11_spill] sm:$0xff] %v1596_v51  ;;  %2047 = vst [vmem:[#allocation12_spill] sm:$0xff] %v1603_v54  ;;  %1118 = vmatprep.subr.mxu0 %v1523_v7  ;;  %1154 = vmatprep.subr.mxu1 %v437_v0  ;;  %v1977_v41 = vand.u32 4294901760, %v1596_v51  ;;  %v1619_v37 = vsub.f32 %v140_v43, %v1598_v52  ;;  %v1622_v61 = vsub.f32 %v124_v45, %v1601_v53 }
  0x28   :  { %2048 = vst [vmem:[#allocation13_spill] sm:$0xff] %v1606_v58  ;;  %2049 = vst [vmem:[#allocation14_spill] sm:$0xff] %v1609_v62  ;;  %v1625_v55 = vsub.f32 %v139_v44, %v1603_v54  ;;  %1119 = vmatpush3.msra.mxu0 %v1534_v18  ;;  %1155 = vmatpush3.msra.mxu1 %v325_v33  ;;  %v1981_v56 = vand.u32 4294901760, %v1606_v58  ;;  %v1982_v57 = vand.u32 4294901760, %v1609_v62  ;;  %v1984_v0 = vand.u32 4294901760, %v1612_v59 }
  0x29   :  { %2050 = vst [vmem:[#allocation15_spill] sm:$0xff] %v1612_v59  ;;  %2051 = vst [vmem:[#allocation16_spill] sm:$0xff] %v1619_v37  ;;  %v1632_v36 = vsub.f32 %v123_v46, %v1615_v50  ;;  %1120 = vmatprep.subr.mxu0 %v1585_v39  ;;  %1156 = vmatprep.subr.mxu1 %v444_v40  ;;  %v450_v44 = vsub.f32 %v1596_v51, %v1977_v41  ;;  %v1990_v45 = vand.u32 4294901760, %v1619_v37 }
  0x2a   :  { %2052 = vst [vmem:[#allocation17_spill] sm:$0xff] %v1622_v61  ;;  %2053 = vst [vmem:[#allocation18_spill] sm:$0xff] %v1625_v55  ;;  %v1993_v33 = vand.u32 4294901760, %v1622_v61  ;;  %v1998_v43 = vand.u32 4294901760, %v1625_v55  ;;  %1121 = vmatpush3.msra.mxu0 %v1588_v48  ;;  %1157 = vmatpush3.msra.mxu1 %v332_v47  ;;  %v338_v46 = vsub.f32 %v1606_v58, %v1981_v56  ;;  %v1667_v51 = vand.u32 4294901760, %v138_v31 }
  0x2b   :  { %2054 = vst [vmem:[#allocation19_spill] sm:$0xff] %v1632_v36  ;;  %v457_v40 = vsub.f32 %v1609_v62, %v1982_v57  ;;  %v345_v41 = vsub.f32 %v1612_v59, %v1984_v0  ;;  %1122 = vmatprep.subr.mxu0 %v1590_v24  ;;  %v451_v30 = vand.u32 4294901760, %v450_v44  ;;  %v464_v47 = vsub.f32 %v1619_v37, %v1990_v45  ;;  %v137_v0 = vld [vmem:[#allocation2 + $0x90] sm:$0xff]  ;;  %v136_v37 = vld [vmem:[#allocation2 + $0x88] sm:$0xff] }
  0x2c   :  { %v352_v56 = vsub.f32 %v1622_v61, %v1993_v33  ;;  %v471_v57 = vsub.f32 %v1625_v55, %v1998_v43  ;;  %1123 = vmatpush3.msra.mxu0 %v1592_v49  ;;  %v339_v35 = vand.u32 4294901760, %v338_v46  ;;  %v2055_v62 = vand.u32 4294901760, %v1632_v36  ;;  %v120_v33 = vld [vmem:[#allocation2 + $0x8] sm:$0xff]  ;;  %v135_v61 = vld [vmem:[#allocation2 + $0x80] sm:$0xff] }
  0x2d   :  { %v458_v59 = vand.u32 4294901760, %v457_v40  ;;  %v346_v44 = vand.u32 4294901760, %v345_v41  ;;  %1124 = vmatprep.subr.mxu0 %v1598_v52  ;;  %1158 = vmatprep.subr.mxu1 %v451_v30  ;;  %v465_v58 = vand.u32 4294901760, %v464_v47  ;;  %v119_v46 = vld [vmem:[#allocation2] sm:$0xff]  ;;  %v1670_v40 = vand.u32 4294901760, %v122_v29 }
  0x2e   :  { %v359_v45 = vsub.f32 %v1632_v36, %v2055_v62  ;;  %v353_v43 = vand.u32 4294901760, %v352_v56  ;;  %v472_v55 = vand.u32 4294901760, %v471_v57  ;;  %1125 = vmatpush3.msra.mxu0 %v1601_v53  ;;  %1159 = vmatpush3.msra.mxu1 %v339_v35  ;;  %v1672_v42 = vand.u32 4294901760, %v137_v0 }
  0x2f   :  { %v1674_v62 = vand.u32 4294901760, %v121_v25  ;;  %1126 = vmatprep.subr.mxu0 %v1603_v54  ;;  %1160 = vmatprep.subr.mxu1 %v458_v59  ;;  %v1678_v30 = vsub.f32 %v138_v31, %v1667_v51  ;;  %v1680_v56 = vand.u32 4294901760, %v136_v37  ;;  %v1682_v57 = vand.u32 4294901760, %v120_v33 }
  0x30   :  { %v360_v41 = vand.u32 4294901760, %v359_v45  ;;  %2056 = vst [vmem:[#allocation20_spill] sm:$0xff] %v1672_v42  ;;  %v1684_v47 = vand.u32 4294901760, %v135_v61  ;;  %1127 = vmatpush3.msra.mxu0 %v1615_v50  ;;  %1161 = vmatpush3.msra.mxu1 %v346_v44  ;;  %v1688_v35 = vsub.f32 %v122_v29, %v1670_v40  ;;  %v1691_v45 = vsub.f32 %v137_v0, %v1672_v42 }
  0x31   :  { %2057 = vst [vmem:[#allocation21_spill] sm:$0xff] %v1678_v30  ;;  %2058 = vst [vmem:[#allocation22_spill] sm:$0xff] %v1682_v57  ;;  %v1694_v59 = vsub.f32 %v121_v25, %v1674_v62  ;;  %v1696_v31 = vand.u32 4294901760, %v119_v46  ;;  %1128 = vmatprep.subr.mxu0 %v1667_v51  ;;  %1162 = vmatprep.subr.mxu1 %v465_v58  ;;  %v1701_v54 = vsub.f32 %v136_v37, %v1680_v56 }
  0x32   :  { %2059 = vst [vmem:[#allocation23_spill] sm:$0xff] %v1684_v47  ;;  %2060 = vst [vmem:[#allocation24_spill] sm:$0xff] %v1688_v35  ;;  %v1704_v44 = vsub.f32 %v120_v33, %v1682_v57  ;;  %v1707_v29 = vsub.f32 %v135_v61, %v1684_v47  ;;  %1129 = vmatpush3.msra.mxu0 %v1670_v40  ;;  %1163 = vmatpush3.msra.mxu1 %v353_v43  ;;  %v2015_v0 = vand.u32 4294901760, %v1691_v45 }
  0x33   :  { %2061 = vst [vmem:[#allocation25_spill] sm:$0xff] %v1691_v45  ;;  %2062 = vst [vmem:[#allocation26_spill] sm:$0xff] %v1694_v59  ;;  %v1714_v36 = vsub.f32 %v119_v46, %v1696_v31  ;;  %1130 = vmatprep.subr.mxu0 %v1672_v42  ;;  %1164 = vmatprep.subr.mxu1 %v472_v55  ;;  %v2068_v37 = vand.u32 4294901760, %v1678_v30  ;;  %v2069_v58 = vand.u32 4294901760, %v1688_v35  ;;  %v2070_v42 = vand.u32 4294901760, %v1694_v59 }
  0x34   :  { %2063 = vst [vmem:[#allocation27_spill] sm:$0xff] %v1696_v31  ;;  %2064 = vst [vmem:[#allocation28_spill] sm:$0xff] %v1701_v54  ;;  %1131 = vmatpush3.msra.mxu0 %v1674_v62  ;;  %1165 = vmatpush3.msra.mxu1 %v360_v41  ;;  %v485_v55 = vsub.f32 %v1691_v45, %v2015_v0  ;;  %v2071_v43 = vand.u32 4294901760, %v1701_v54 }
  0x35   :  { %2065 = vst [vmem:[#allocation29_spill] sm:$0xff] %v1704_v44  ;;  %2066 = vst [vmem:[#allocation30_spill] sm:$0xff] %v1707_v29  ;;  %v478_v61 = vsub.f32 %v1678_v30, %v2068_v37  ;;  %v366_v46 = vsub.f32 %v1688_v35, %v2069_v58  ;;  %v373_v37 = vsub.f32 %v1694_v59, %v2070_v42  ;;  %1132 = vmatprep.subr.mxu0 %v1680_v56 }
  0x36   :  { %2067 = vst [vmem:[#allocation31_spill] sm:$0xff] %v1714_v36  ;;  %v492_v41 = vsub.f32 %v1701_v54, %v2071_v43  ;;  %v2072_v30 = vand.u32 4294901760, %v1704_v44  ;;  %v2073_v35 = vand.u32 4294901760, %v1707_v29  ;;  %1133 = vmatpush3.msra.mxu0 %v1682_v57  ;;  %v486_v59 = vand.u32 4294901760, %v485_v55 }
  0x37   :  { %v479_v25 = vand.u32 4294901760, %v478_v61  ;;  %v367_v42 = vand.u32 4294901760, %v366_v46  ;;  %v374_v33 = vand.u32 4294901760, %v373_v37  ;;  %v2074_v45 = vand.u32 4294901760, %v1714_v36  ;;  %1134 = vmatprep.subr.mxu0 %v1684_v47 }
  0x38   :  { %v380_v58 = vsub.f32 %v1704_v44, %v2072_v30  ;;  %v499_v0 = vsub.f32 %v1707_v29, %v2073_v35  ;;  %v493_v43 = vand.u32 4294901760, %v492_v41  ;;  %1135 = vmatpush3.msra.mxu0 %v1696_v31 }
  0x39   :  { %v387_v61 = vsub.f32 %v1714_v36, %v2074_v45  ;;  %1166 = vmatprep.subr.mxu1 %v479_v25  ;;  %1180 = vmatprep.subr.mxu0 %v1435_v14  ;;  %v28_v45 = vlaneseq }
  0x3a   :  { %1167 = vmatpush3.msra.mxu1 %v367_v42  ;;  %v381_v30 = vand.u32 4294901760, %v380_v58  ;;  %v500_v35 = vand.u32 4294901760, %v499_v0  ;;  %v1399_v0 = vmov 0.0  }
  0x3b   :  { %1168 = vmatprep.subr.mxu1 %v486_v59  ;;  %v388_v46 = vand.u32 4294901760, %v387_v61  ;;  %v29_v55 = vand.u32 127, %v28_v45 }
  0x3c   :  { %1169 = vmatpush3.msra.mxu1 %v374_v33 }
  0x3d   :  { %1170 = vmatprep.subr.mxu1 %v493_v43  ;;  %v30_v25 = vadd.s32 128, %v29_v55 }
  0x3e   :  { %1171 = vmatpush3.msra.mxu1 %v381_v30 }
  0x3f   :  { %1172 = vmatprep.subr.mxu1 %v500_v35 }
  0x40   :  { %1173 = vmatpush3.msra.mxu1 %v388_v46 }
  0x41   :  { %1218 = vmatprep.subr.mxu1 %v1426_v4 }
  0x8b   :  { %v33_v37 = vpop.permute.xlu0 %32  ;;  %v77_v41 = vpop.permute.xlu1 %76 }
  0x8c   :  { %vm37_vm0 = vcmp.eq.s32.totalorder %v29_v55, %v33_v37  ;;  %vm38_vm1 = vcmp.eq.s32.totalorder %v30_v25, %v33_v37  ;;  %vm81_vm2 = vcmp.eq.s32.totalorder %v29_v55, %v77_v41  ;;  %vm82_vm3 = vcmp.eq.s32.totalorder %v30_v25, %v77_v41 }
  0x8d   :  { %v1088_v33 = vsel %vm37_vm0, 1.0, %v1399_v0  ;;  %v1089_v42 = vsel %vm38_vm1, 1.0, %v1399_v0  ;;  %v1096_v46 = vsel %vm81_vm2, 1.0, %v1399_v0  ;;  %v1097_v45 = vsel %vm82_vm3, 1.0, %v1399_v0 }
  0x90   :  { %v55_v58 = vpop.permute.xlu0 %54  ;;  %v99_v59 = vpop.permute.xlu1 %98 }
  0x91   :  { %vm59_vm4 = vcmp.eq.s32.totalorder %v29_v55, %v55_v58  ;;  %vm60_vm5 = vcmp.eq.s32.totalorder %v30_v25, %v55_v58  ;;  %vm103_vm6 = vcmp.eq.s32.totalorder %v29_v55, %v99_v59  ;;  %vm104_vm7 = vcmp.eq.s32.totalorder %v30_v25, %v99_v59 }
  0x92   :  { %v1092_v61 = vsel %vm59_vm4, 1.0, %v1399_v0  ;;  %v1093_v43 = vsel %vm60_vm5, 1.0, %v1399_v0  ;;  %v1100_v14 = vsel %vm103_vm6, 1.0, %v1399_v0  ;;  %v1101_v36 = vsel %vm104_vm7, 1.0, %v1399_v0 }
  0x93   :  { %v71_v30 = vadd.f32 %v1092_v61, %v1088_v33  ;;  %v72_v35 = vadd.f32 %v1093_v43, %v1089_v42 }
  0x94   :  { %v58_v37 = vpop.permute.xlu0 %57 }
  0x95   :  { %v93_v29 = vadd.f32 %v1096_v46, %v71_v30  ;;  %v94_v41 = vadd.f32 %v1097_v45, %v72_v35  ;;  %vm61_vm8 = vcmp.eq.s32.totalorder %v29_v55, %v58_v37  ;;  %vm62_vm9 = vcmp.eq.s32.totalorder %v30_v25, %v58_v37  ;;  %v36_v44 = vpop.permute.xlu1 %35 }
  0x96   :  { %v1094_v58 = vsel %vm61_vm8, 1.0, %v1399_v0  ;;  %v1095_v54 = vsel %vm62_vm9, 1.0, %v1399_v0  ;;  %vm39_vm10 = vcmp.eq.s32.totalorder %v29_v55, %v36_v44  ;;  %vm40_vm11 = vcmp.eq.s32.totalorder %v30_v25, %v36_v44 }
  0x97   :  { %v115_v59 = vadd.f32 %v1100_v14, %v93_v29  ;;  %v116_v4 = vadd.f32 %v1101_v36, %v94_v41  ;;  %v1090_v31 = vsel %vm39_vm10, 1.0, %v1399_v0  ;;  %v1091_v47 = vsel %vm40_vm11, 1.0, %v1399_v0 }
  0x98   :  { %v73_v43 = vadd.f32 %v1094_v58, %v1090_v31  ;;  %v74_v57 = vadd.f32 %v1095_v54, %v1091_v47 }
  0x99   :  { %v1752_v33 = vand.u32 4294901760, %v116_v4  ;;  %v1754_v42 = vand.u32 4294901760, %v115_v59  ;;  %v102_v61 = vpop.permute.xlu0 %101 }
  0x9a   :  { %v80_v30 = vpop.permute.xlu1 %79  ;;  %vm105_vm12 = vcmp.eq.s32.totalorder %v29_v55, %v102_v61  ;;  %vm106_vm13 = vcmp.eq.s32.totalorder %v30_v25, %v102_v61 }
  0x9b   :  { %2075 = vst [vmem:[#allocation32_spill] sm:$0xff] %v1754_v42  ;;  %v1757_v35 = vsub.f32 %v115_v59, %v1754_v42  ;;  %vm83_vm14 = vcmp.eq.s32.totalorder %v29_v55, %v80_v30  ;;  %vm84_vm15 = vcmp.eq.s32.totalorder %v30_v25, %v80_v30  ;;  %503 = vmatprep.mubr.f32.mxu1 %v1752_v33  ;;  %v1102_v14 = vsel %vm105_vm12, 1.0, %v1399_v0 }
  0x9c   :  { %v1098_v36 = vsel %vm83_vm14, 1.0, %v1399_v0  ;;  %v1099_v44 = vsel %vm84_vm15, 1.0, %v1399_v0  ;;  %505 = vmatmul.mubr.f32.vlgmr.msra.gmra.mxu1 %v1754_v42  ;;  %v1103_v29 = vsel %vm106_vm13, 1.0, %v1399_v0  ;;  %v248_v46 = vsub.f32 %v116_v4, %v1752_v33  ;;  %v2095_v42 = vld [vmem:[#allocation25_spill] sm:$0xff] }
  0x9d   :  { %v95_v31 = vadd.f32 %v1098_v36, %v73_v43  ;;  %v96_v54 = vadd.f32 %v1099_v44, %v74_v57  ;;  %1219 = vmatpush3.msra.mxu1 %v1428_v8  ;;  %v255_v47 = vand.u32 4294901760, %v1757_v35 }
  0x9e   :  { %1220 = vmatprep.subr.mxu1 %v1430_v9  ;;  %v249_v55 = vand.u32 4294901760, %v248_v46 }
  0x9f   :  { %v117_v25 = vadd.f32 %v1102_v14, %v95_v31  ;;  %v118_v45 = vadd.f32 %v1103_v29, %v96_v54  ;;  %1221 = vmatpush3.msra.mxu1 %v1432_v10  ;;  %v256_v37 = vsub.f32 %v1757_v35, %v255_v47  ;;  %v2078_v31 = vld [vmem:[#allocation12_spill] sm:$0xff]  ;;  %v2080_v54 = vld [vmem:[#allocation11_spill] sm:$0xff] }
  0xa0   :  { %1222 = vmatprep.subr.mxu1 %v1437_v15  ;;  %v250_v4 = vsub.f32 %v248_v46, %v249_v55 }
  0xa1   :  { %v1770_v0 = vand.u32 4294901760, %v118_v45  ;;  %v1772_v57 = vand.u32 4294901760, %v117_v25  ;;  %1223 = vmatpush3.msra.mxu1 %v1439_v16  ;;  %v257_v41 = vand.u32 4294901760, %v256_v37  ;;  %v2084_v37 = vld [vmem:[#allocation15_spill] sm:$0xff] }
  0xa2   :  { %1224 = vmatprep.subr.mxu1 %v1441_v17  ;;  %v251_v58 = vand.u32 4294901760, %v250_v4  ;;  %v2085_v4 = vld [vmem:[#allocation16_spill] sm:$0xff] }
  0xa3   :  { %2076 = vst [vmem:[#allocation33_spill] sm:$0xff] %v1770_v0  ;;  %2077 = vst [vmem:[#allocation34_spill] sm:$0xff] %v1772_v57  ;;  %v1777_v59 = vsub.f32 %v118_v45, %v1770_v0  ;;  %v1780_v61 = vsub.f32 %v117_v25, %v1772_v57  ;;  %1225 = vmatpush3.msra.mxu1 %v1453_v22  ;;  %510 = vmatprep.mubr.f32.mxu1 %v1770_v0  ;;  %v2082_v25 = vld [vmem:[#allocation14_spill] sm:$0xff]  ;;  %v2083_v45 = vld [vmem:[#allocation20_spill] sm:$0xff] }
  0xa4   :  { %252 = vmatprep.mubr.f32.mxu0 %v251_v58  ;;  %1226 = vmatprep.subr.mxu1 %v1506_v60  ;;  %v2087_v58 = vld [vmem:[#allocation22_spill] sm:$0xff]  ;;  %v2094_v0 = vld [vmem:[#allocation24_spill] sm:$0xff] }
  0xa5   :  { %258 = vmatmul.mubr.f32.vlgmr.msra.gmra.mxu0 %v257_v41  ;;  %512 = vmatmul.mubr.f32.gmra.mxu1 %v1772_v57  ;;  %v264_v43 = vand.u32 4294901760, %v1777_v59  ;;  %v2036_v30 = vand.u32 4294901760, %v1780_v61  ;;  %v2086_v41 = vld [vmem:[#allocation17_spill] sm:$0xff]  ;;  %v2093_v57 = vld [vmem:[#allocation8_spill] sm:$0xff] }
  0xa6   :  { %1181 = vmatpush3.msra.mxu0 %v1445_v19  ;;  %1227 = vmatpush3.msra.mxu1 %v1508_v63 }
  0xa7   :  { %1182 = vmatprep.subr.mxu0 %v1448_v20  ;;  %1228 = vmatprep.subr.mxu1 %v1510_v1  ;;  %v265_v14 = vsub.f32 %v1777_v59, %v264_v43  ;;  %v271_v36 = vsub.f32 %v1780_v61, %v2036_v30  ;;  %v2092_v30 = vld [vmem:[#allocation21_spill] sm:$0xff] }
  0xa8   :  { %763 = vmatprep.mubr.f32.mxu1 %v249_v55  ;;  %1183 = vmatpush3.msra.mxu0 %v1451_v21  ;;  %v2081_v55 = vld [vmem:[#allocation13_spill] sm:$0xff] }
  0xa9   :  { %1229 = vmatpush3.msra.mxu1 %v1512_v2  ;;  %1184 = vmatprep.subr.mxu0 %v1458_v26  ;;  %v266_v44 = vand.u32 4294901760, %v265_v14  ;;  %v272_v29 = vand.u32 4294901760, %v271_v36  ;;  %v2088_v14 = vld [vmem:[#allocation18_spill] sm:$0xff]  ;;  %v2089_v36 = vld [vmem:[#allocation23_spill] sm:$0xff] }
  0xaa   :  { %1230 = vmatprep.subr.mxu1 %v1518_v5  ;;  %1185 = vmatpush3.msra.mxu0 %v1461_v27 }
  0xab   :  { %1231 = vmatpush3.msra.mxu1 %v1520_v6  ;;  %1186 = vmatprep.subr.mxu0 %v1464_v28 }
  0xac   :  { %1232 = vmatprep.subr.mxu1 %v1523_v7  ;;  %1187 = vmatpush3.msra.mxu0 %v1470_v32 }
  0xad   :  { %1233 = vmatpush3.msra.mxu1 %v1534_v18  ;;  %267 = vmatprep.mubr.f32.mxu0 %v266_v44  ;;  %v2090_v44 = vld [vmem:[#allocation19_spill] sm:$0xff] }
  0xae   :  { %1188 = vmatprep.subr.mxu0 %v1516_v3  ;;  %1234 = vmatprep.subr.mxu1 %v1585_v39 }
  0xaf   :  { %273 = vmatmul.mubr.f32.gmra.mxu0 %v272_v29  ;;  %1235 = vmatpush3.msra.mxu1 %v1588_v48  ;;  %v2091_v29 = vld [vmem:[#allocation27_spill] sm:$0xff] }
  0xb0   :  { %1189 = vmatpush3.msra.mxu0 %v1526_v11  ;;  %647 = vmatprep.mubr.f32.mxu0 %v248_v46  ;;  %v2079_v46 = vld [vmem:[#allocation10_spill] sm:$0xff] }
  0xb1   :  { %1190 = vmatprep.subr.mxu0 %v1529_v12  ;;  %1236 = vmatprep.subr.mxu1 %v1590_v24 }
  0xb2   :  { %1191 = vmatpush3.msra.mxu0 %v1532_v13  ;;  %1237 = vmatpush3.msra.mxu1 %v1592_v49 }
  0xb3   :  { %1192 = vmatprep.subr.mxu0 %v1539_v34  ;;  %1238 = vmatprep.subr.mxu1 %v1598_v52 }
  0xb4   :  { %1193 = vmatpush3.msra.mxu0 %v1542_v23  ;;  %1239 = vmatpush3.msra.mxu1 %v1601_v53 }
  0xb5   :  { %1194 = vmatprep.subr.mxu0 %v1545_v38  ;;  %1240 = vmatprep.subr.mxu1 %v2078_v31 }
  0xb6   :  { %1195 = vmatpush3.msra.mxu0 %v2079_v46  ;;  %1241 = vmatpush3.msra.mxu1 %v1615_v50 }
  0xb7   :  { %1196 = vmatprep.subr.mxu0 %v2080_v54  ;;  %1242 = vmatprep.subr.mxu1 %v1667_v51 }
  0xb8   :  { %1197 = vmatpush3.msra.mxu0 %v2081_v55  ;;  %1243 = vmatpush3.msra.mxu1 %v1670_v40 }
  0xb9   :  { %1198 = vmatprep.subr.mxu0 %v2082_v25  ;;  %1244 = vmatprep.subr.mxu1 %v2083_v45 }
  0xba   :  { %1199 = vmatpush3.msra.mxu0 %v2084_v37  ;;  %1245 = vmatpush3.msra.mxu1 %v1674_v62 }
  0xbb   :  { %1200 = vmatprep.subr.mxu0 %v2085_v4  ;;  %1246 = vmatprep.subr.mxu1 %v1680_v56 }
  0xbc   :  { %1201 = vmatpush3.msra.mxu0 %v2086_v41  ;;  %1247 = vmatpush3.msra.mxu1 %v2087_v58 }
  0xbd   :  { %1202 = vmatprep.subr.mxu0 %v2088_v14  ;;  %1248 = vmatprep.subr.mxu1 %v2089_v36  ;;  %v2096_v36 = vld [vmem:[#allocation26_spill] sm:$0xff] }
  0xbe   :  { %1203 = vmatpush3.msra.mxu0 %v2090_v44  ;;  %1249 = vmatpush3.msra.mxu1 %v2091_v29  ;;  %v2097_v29 = vld [vmem:[#allocation28_spill] sm:$0xff] }
  0xbf   :  { %1204 = vmatprep.subr.mxu0 %v2092_v30  ;;  %767 = vmatmul.mubr.f32.vlgmr.msra.gmra.mxu1 %v255_v47  ;;  %v2098_v30 = vand.u32 4294901760, %v1780_v61  ;;  %v2099_v47 = vld [vmem:[#allocation29_spill] sm:$0xff] }
  0xc0   :  { %1294 = vmatprep.subr.mxu1 %v2093_v57  ;;  %1205 = vmatpush3.msra.mxu0 %v2094_v0 }
  0xc1   :  { %774 = vmatprep.mubr.f32.mxu1 %v264_v43  ;;  %1295 = vmatpush3.msra.mxu1 %v1428_v8  ;;  %v2100_v8 = vld [vmem:[#allocation30_spill] sm:$0xff] }
  0xc2   :  { %1206 = vmatprep.subr.mxu0 %v2095_v42  ;;  %1296 = vmatprep.subr.mxu1 %v1430_v9  ;;  %v2101_v9 = vld [vmem:[#allocation31_spill] sm:$0xff] }
  0xc3   :  { %1207 = vmatpush3.msra.mxu0 %v2096_v36  ;;  %1297 = vmatpush3.msra.mxu1 %v1432_v10  ;;  %v2102_v10 = vld [vmem:[#allocation9_spill] sm:$0xff] }
  0xc4   :  { %1208 = vmatprep.subr.mxu0 %v2097_v29  ;;  %778 = vmatmul.mubr.f32.gmra.mxu1 %v2098_v30  ;;  %v2103_v57 = vand.u32 4294901760, %v2102_v10 }
  0xc5   :  { %1298 = vmatprep.subr.mxu1 %v1437_v15  ;;  %1209 = vmatpush3.msra.mxu0 %v2099_v47  ;;  %v2104_v15 = vand.u32 4294901760, %v1445_v19  ;;  %v2108_v19 = vand.u32 4294901760, %v1461_v27  ;;  %v2112_v27 = vand.u32 4294901760, %v1526_v11  ;;  %v2123_v11 = vand.u32 4294901760, %v2085_v4 }
  0xc6   :  { %1299 = vmatpush3.msra.mxu1 %v1439_v16  ;;  %1055 = vmatprep.mubr.f32.mxu1 %v1752_v33  ;;  %v2105_v16 = vand.u32 4294901760, %v1448_v20  ;;  %v2109_v20 = vand.u32 4294901760, %v1464_v28  ;;  %v2113_v28 = vand.u32 4294901760, %v1529_v12  ;;  %v2124_v12 = vand.u32 4294901760, %v2086_v41 }
  0xc7   :  { %1210 = vmatprep.subr.mxu0 %v2100_v8  ;;  %1300 = vmatprep.subr.mxu1 %v1441_v17  ;;  %v2106_v17 = vand.u32 4294901760, %v1451_v21  ;;  %v2110_v21 = vand.u32 4294901760, %v1470_v32  ;;  %v2114_v32 = vand.u32 4294901760, %v1532_v13  ;;  %v2125_v13 = vand.u32 4294901760, %v2088_v14 }
  0xc8   :  { %1211 = vmatpush3.msra.mxu0 %v2101_v9  ;;  %1301 = vmatpush3.msra.mxu1 %v1453_v22  ;;  %v2107_v22 = vand.u32 4294901760, %v1458_v26  ;;  %v2111_v26 = vand.u32 4294901760, %v1516_v3  ;;  %v2119_v3 = vand.u32 4294901760, %v2080_v54 }
  0xc9   :  { %650 = vmatmul.mubr.f32.vlgmr.msra.gmra.mxu0 %v1757_v35  ;;  %1256 = vmatprep.subr.mxu0 %v2103_v57 }
  0xca   :  { %1302 = vmatprep.subr.mxu1 %v1506_v60  ;;  %656 = vmatprep.mubr.f32.mxu0 %v1777_v59  ;;  %v2115_v60 = vand.u32 4294901760, %v1539_v34  ;;  %v2128_v34 = vld [vmem:[#allocation27_spill] sm:$0xff] }
  0xcb   :  { %1257 = vmatpush3.msra.mxu0 %v2104_v15  ;;  %1303 = vmatpush3.msra.mxu1 %v1508_v63  ;;  %v2116_v63 = vand.u32 4294901760, %v1542_v23  ;;  %v2129_v23 = vld [vmem:[#allocation21_spill] sm:$0xff] }
  0xcc   :  { %1258 = vmatprep.subr.mxu0 %v2105_v16  ;;  %1304 = vmatprep.subr.mxu1 %v1510_v1  ;;  %v2117_v1 = vand.u32 4294901760, %v1545_v38  ;;  %v2130_v38 = vand.u32 4294901760, %v2129_v23 }
  0xcd   :  { %1259 = vmatpush3.msra.mxu0 %v2106_v17  ;;  %1305 = vmatpush3.msra.mxu1 %v1512_v2  ;;  %v2118_v2 = vand.u32 4294901760, %v2079_v46 }
  0xce   :  { %659 = vmatmul.mubr.f32.gmra.mxu0 %v1780_v61  ;;  %1260 = vmatprep.subr.mxu0 %v2107_v22 }
  0xcf   :  { %1306 = vmatprep.subr.mxu1 %v1518_v5  ;;  %1261 = vmatpush3.msra.mxu0 %v2108_v19  ;;  %v2120_v5 = vand.u32 4294901760, %v2081_v55 }
  0xd0   :  { %944 = vmatprep.mubr.f32.mxu0 %v1752_v33  ;;  %1307 = vmatpush3.msra.mxu1 %v1520_v6  ;;  %v2121_v6 = vand.u32 4294901760, %v2082_v25 }
  0xd1   :  { %1262 = vmatprep.subr.mxu0 %v2109_v20  ;;  %1308 = vmatprep.subr.mxu1 %v1523_v7  ;;  %v2122_v7 = vand.u32 4294901760, %v2084_v37 }
  0xd2   :  { %1263 = vmatpush3.msra.mxu0 %v2110_v21  ;;  %1309 = vmatpush3.msra.mxu1 %v1534_v18  ;;  %v2126_v18 = vld [vmem:[#allocation23_spill] sm:$0xff] }
  0xd3   :  { %1264 = vmatprep.subr.mxu0 %v2111_v26  ;;  %1310 = vmatprep.subr.mxu1 %v1585_v39  ;;  %v2131_v39 = vld [vmem:[#allocation32_spill] sm:$0xff] }
  0xd4   :  { %1265 = vmatpush3.msra.mxu0 %v2112_v27  ;;  %1311 = vmatpush3.msra.mxu1 %v1588_v48  ;;  %v2133_v48 = vld [vmem:[#allocation33_spill] sm:$0xff] }
  0xd5   :  { %1266 = vmatprep.subr.mxu0 %v2113_v28  ;;  %1312 = vmatprep.subr.mxu1 %v1590_v24  ;;  %v2127_v24 = vand.u32 4294901760, %v2090_v44 }
  0xd6   :  { %1267 = vmatpush3.msra.mxu0 %v2114_v32  ;;  %1313 = vmatpush3.msra.mxu1 %v1592_v49  ;;  %v2132_v49 = vand.u32 4294901760, %v2094_v0 }
  0xd7   :  { %1268 = vmatprep.subr.mxu0 %v2115_v60  ;;  %1314 = vmatprep.subr.mxu1 %v1598_v52  ;;  %v2135_v52 = vand.u32 4294901760, %v2096_v36 }
  0xd8   :  { %1269 = vmatpush3.msra.mxu0 %v2116_v63  ;;  %1315 = vmatpush3.msra.mxu1 %v1601_v53  ;;  %v2136_v53 = vand.u32 4294901760, %v2097_v29 }
  0xd9   :  { %1270 = vmatprep.subr.mxu0 %v2117_v1  ;;  %1316 = vmatprep.subr.mxu1 %v2078_v31 }
  0xda   :  { %1271 = vmatpush3.msra.mxu0 %v2118_v2  ;;  %1317 = vmatpush3.msra.mxu1 %v1615_v50  ;;  %v2137_v50 = vld [vmem:[#allocation34_spill] sm:$0xff] }
  0xdb   :  { %1272 = vmatprep.subr.mxu0 %v2119_v3  ;;  %1318 = vmatprep.subr.mxu1 %v1667_v51  ;;  %v2134_v51 = vand.u32 4294901760, %v2095_v42 }
  0xdc   :  { %1273 = vmatpush3.msra.mxu0 %v2120_v5  ;;  %1319 = vmatpush3.msra.mxu1 %v1670_v40  ;;  %v2138_v40 = vand.u32 4294901760, %v2099_v47 }
  0xdd   :  { %1274 = vmatprep.subr.mxu0 %v2121_v6  ;;  %1320 = vmatprep.subr.mxu1 %v2083_v45 }
  0xde   :  { %1275 = vmatpush3.msra.mxu0 %v2122_v7  ;;  %1321 = vmatpush3.msra.mxu1 %v1674_v62  ;;  %v2139_v62 = vand.u32 4294901760, %v2100_v8 }
  0xdf   :  { %1276 = vmatprep.subr.mxu0 %v2123_v11  ;;  %1322 = vmatprep.subr.mxu1 %v1680_v56  ;;  %v2140_v56 = vand.u32 4294901760, %v2101_v9 }
  0xe0   :  { %1277 = vmatpush3.msra.mxu0 %v2124_v12  ;;  %1323 = vmatpush3.msra.mxu1 %v2087_v58 }
  0xe1   :  { %1278 = vmatprep.subr.mxu0 %v2125_v13  ;;  %1324 = vmatprep.subr.mxu1 %v2126_v18 }
  0xe2   :  { %1279 = vmatpush3.msra.mxu0 %v2127_v24  ;;  %1325 = vmatpush3.msra.mxu1 %v2128_v34 }
  0xe3   :  { %1280 = vmatprep.subr.mxu0 %v2130_v38  ;;  %1057 = vmatmul.mubr.f32.vlgmr.msra.gmra.mxu1 %v2131_v39 }
  0xe4   :  { %1281 = vmatpush3.msra.mxu0 %v2132_v49  ;;  %1062 = vmatprep.mubr.f32.mxu1 %v2133_v48 }
  0xe5   :  { %1282 = vmatprep.subr.mxu0 %v2134_v51 }
  0xe6   :  { %1283 = vmatpush3.msra.mxu0 %v2135_v52 }
  0xe7   :  { %1284 = vmatprep.subr.mxu0 %v2136_v53  ;;  %1064 = vmatmul.mubr.f32.gmra.mxu1 %v2137_v50 }
  0xe8   :  { %1285 = vmatpush3.msra.mxu0 %v2138_v40 }
  0xe9   :  { %1286 = vmatprep.subr.mxu0 %v2139_v62 }
  0xea   :  { %1287 = vmatpush3.msra.mxu0 %v2140_v56 }
  0xeb   :  { %946 = vmatmul.mubr.f32.vlgmr.msra.gmra.mxu0 %v2131_v39 }
  0xec   :  { %951 = vmatprep.mubr.f32.mxu0 %v2133_v48 }
  0xef   :  { %953 = vmatmul.mubr.f32.gmra.mxu0 %v2137_v50 }
 0x15c   :  { %v1174_v33 = vpop.f32.mrf.mxu1 }
 0x15e   :  { %v1175_v42 = vpop.f32.mrf.mxu1 }
 0x15f   :  { %v1176_v58 = vadd.f32 %v1175_v42, %v1174_v33 }
 0x165   :  { %v1136_v35 = vpop.f32.mrf.mxu0  ;;  %v1177_v0 = vpop.f32.mrf.mxu1 }
 0x167   :  { %v1137_v59 = vpop.f32.mrf.mxu0  ;;  %v1178_v61 = vpop.f32.mrf.mxu1 }
 0x168   :  { %v1138_v4 = vadd.f32 %v1137_v59, %v1136_v35  ;;  %v1179_v8 = vadd.f32 %v1178_v61, %v1177_v0 }
 0x16a   :  { %v507_v44 = vadd.f32 %v1176_v58, %v1138_v4 }
 0x16f   :  { %v1139_v43 = vpop.f32.mrf.mxu0 }
 0x171   :  { %v1140_v31 = vpop.f32.mrf.mxu0 }
 0x172   :  { %v1141_v29 = vadd.f32 %v1140_v31, %v1139_v43 }
 0x174   :  { %v514_v15 = vadd.f32 %v1179_v8, %v1141_v29 }
 0x17f   :  { %v1250_v30 = vpop.f32.mrf.mxu1 }
 0x181   :  { %v1251_v46 = vpop.f32.mrf.mxu1 }
 0x182   :  { %v1252_v16 = vadd.f32 %v1251_v46, %v1250_v30 }
 0x184   :  { %v1253_v55 = vpop.f32.mrf.mxu1 }
 0x186   :  { %v1254_v45 = vpop.f32.mrf.mxu1 }
 0x187   :  { %v1255_v27 = vadd.f32 %v1254_v45, %v1253_v55 }
 0x189   :  { %v1212_v54 = vpop.f32.mrf.mxu0 }
 0x18b   :  { %v1213_v25 = vpop.f32.mrf.mxu0 }
 0x18c   :  { %v1214_v14 = vadd.f32 %v1213_v25, %v1212_v54 }
 0x18e   :  { %v1215_v37 = vpop.f32.mrf.mxu0  ;;  %v652_v9 = vadd.f32 %v1214_v14, %v507_v44 }
 0x190   :  { %v1216_v36 = vpop.f32.mrf.mxu0  ;;  %v769_v20 = vadd.f32 %v1252_v16, %v652_v9 }
 0x191   :  { %v1217_v10 = vadd.f32 %v1216_v36, %v1215_v37 }
 0x193   :  { %v661_v19 = vadd.f32 %v1217_v10, %v514_v15 }
 0x195   :  { %v780_v2 = vadd.f32 %v1255_v27, %v661_v19 }
 0x1a3   :  { %v1326_v41 = vpop.f32.mrf.mxu1 }
 0x1a5   :  { %v1327_v47 = vpop.f32.mrf.mxu1 }
 0x1a6   :  { %v1328_v28 = vadd.f32 %v1327_v47, %v1326_v41 }
 0x1a7   :  { %v1329_v17 = vpop.f32.mrf.mxu1 }
 0x1a9   :  { %v1330_v60 = vpop.f32.mrf.mxu1 }
 0x1aa   :  { %v1331_v5 = vadd.f32 %v1330_v60, %v1329_v17 }
 0x1ab   :  { %v1288_v57 = vpop.f32.mrf.mxu0 }
 0x1ad   :  { %v1289_v22 = vpop.f32.mrf.mxu0 }
 0x1ae   :  { %v1290_v21 = vadd.f32 %v1289_v22, %v1288_v57 }
 0x1af   :  { %v1291_v26 = vpop.f32.mrf.mxu0 }
 0x1b0   :  { %v948_v32 = vadd.f32 %v1290_v21, %v769_v20 }
 0x1b1   :  { %v1292_v63 = vpop.f32.mrf.mxu0 }
 0x1b2   :  { %v1059_v1 = vadd.f32 %v1328_v28, %v948_v32  ;;  %v1293_v3 = vadd.f32 %v1292_v63, %v1291_v26 }
 0x1b4   :  { %1069 = vst [vmem:[#allocation5] sm:$0xff] %v1059_v1  ;;  %v955_v6 = vadd.f32 %v1293_v3, %v780_v2 }
 0x1b6   :  { %v1066_v7 = vadd.f32 %v1331_v5, %v955_v6 }
 0x1b8   :  { %1070 = vst [vmem:[#allocation5 + $0x8] sm:$0xff] %v1066_v7 }
 0x1b9   :  { %1379 = shalt.err (!%p1376_p9)
}
 0x1ba   :  { %1082 = dma.vmem_to_hbm [thread:$0]  %s1077_s19, 256, %s1965_s2, [#allocation4], %s1393_s12, %s1393_s12, %s1394_s13  }
 0x1bb   :  { %1390 = dma.done.wait [#allocation4], 256  }
 0x1bc   :  { %1391 = vsyncadd [#allocation4], 4294967040 }
 0x1bd   :  { %1086 = vsyncpa [#allocation3], 1 }
 0x1be   :  { %1087 = vsyncpa [#allocation4], 1 }

</bundles_post_ra>
